<compile_context>
chip_gen: v6e
topology: v6e:2x2x1
jax: 0.10.0
libtpu: 0.0.40
codegen_flags: <defaults>
</compile_context>

<pallas_src>
import functools
import math

import jax
import jax.numpy as jnp
from jax import lax
from jax.experimental import pallas as pl
from jax.experimental.pallas import tpu as pltpu


def _i32(v):
    """Python int -> int32 constant with two's-complement wraparound."""
    v &= 0xFFFFFFFF
    if v >= 1 << 31:
        v -= 1 << 32
    return jnp.int32(v)


def _pe_dropout_kernel(seed_ref, x_ref, pe_ref, o_ref, *,
                       p, training, tile_rows, d_model):
    i = pl.program_id(0)

    # pe is fully resident in VMEM; slice out the rows belonging to this tile.
    row0 = pl.multiple_of(i * tile_rows, tile_rows)
    pe_tile = pe_ref[pl.ds(row0, tile_rows), :]

    y = x_ref[...].astype(jnp.float32) + pe_tile.astype(jnp.float32)

    if training and p > 0.0:
        # Inverted dropout. Randomness = murmur3-style finalizer applied to the
        # global element index mixed with the seed (grid/tiling invariant, so
        # every tile gets a decorrelated mask). int32 math wraps mod 2^32 and
        # is bit-identical to the uint32 formulation.
        shape = y.shape
        rows = lax.broadcasted_iota(jnp.int32, shape, 0) + i * tile_rows
        cols = lax.broadcasted_iota(jnp.int32, shape, 1)
        h = rows * d_model + cols
        h = h ^ seed_ref[0]
        s16 = jnp.full(shape, 16, dtype=jnp.int32)
        s13 = jnp.full(shape, 13, dtype=jnp.int32)
        h = (h ^ lax.shift_right_logical(h, s16)) * _i32(0x85EBCA6B)
        h = (h ^ lax.shift_right_logical(h, s13)) * _i32(0xC2B2AE35)
        h = h ^ lax.shift_right_logical(h, s16)
        # Low 24 bits ~ Uniform[0, 2^24): drop iff below p * 2^24.
        u24 = h & 0x00FFFFFF
        thr = int(round(p * float(1 << 24)))          # p < 1.0 assumed
        keep = u24 >= thr
        scale = jnp.float32(1.0 / (1.0 - p))
        y = jnp.where(keep, y * scale, jnp.zeros_like(y))

    o_ref[...] = y.astype(o_ref.dtype)


def positional_encoding_forward(x, pe, seed, *, p=0.1, training=False,
                                tile_rows=None):
    """x: (S, D); pe: (S, D) positional table; seed: int for the dropout mask."""
    S, D = x.shape
    assert pe.shape == (S, D), "pe must match x (torch adds pe.squeeze())"

    # Row-tile size: multiple of 8 (f32 sublanes), large enough to approach the
    # HBM roofline, capped at the full sequence length.
    if tile_rows is None:
        tile_rows = 512
    tile_rows = min(int(tile_rows), S)
    if tile_rows < S:
        tile_rows = max(8, (tile_rows // 8) * 8)
    grid_s = pl.cdiv(S, tile_rows)

    # Pad the resident pe table to a whole number of tiles so the in-kernel
    # dynamic slice never reads out of bounds on a partial last tile.
    s_pad = grid_s * tile_rows
    pe_res = pe if s_pad == S else jnp.pad(pe, ((0, s_pad - S), (0, 0)))

    kernel = functools.partial(_pe_dropout_kernel, p=float(p),
                               training=bool(training),
                               tile_rows=tile_rows, d_model=D)
    seed_arr = jnp.asarray([seed], dtype=jnp.int32)

    return pl.pallas_call(
        kernel,
        out_shape=jax.ShapeDtypeStruct((S, D), x.dtype),
        grid_spec=pltpu.PrefetchScalarGridSpec(
            num_scalar_prefetch=1,
            grid=(grid_s,),
            in_specs=[
                # x: streamed tile-by-tile along the sequence axis (pipelined).
                pl.BlockSpec((tile_rows, D), lambda i, seed_ref: (i, 0)),
                # pe: full-extent block, same index every step -> DMA'd once,
                # stays resident in VMEM for the whole grid.
                pl.BlockSpec((s_pad, D), lambda i, seed_ref: (0, 0)),
            ],
            out_specs=pl.BlockSpec((tile_rows, D), lambda i, seed_ref: (i, 0)),
        ),
        compiler_params=pltpu.CompilerParams(
            # Row tiles are independent -> shard across v7x's two TensorCores.
            dimension_semantics=("parallel",),
            # Headroom for resident pe + double-buffered x/out tiles at
            # realistic (max_len, d_model); still fits v7x's 64 MiB VMEM.
            vmem_limit_bytes=48 * 1024 * 1024,
        ),
    )(seed_arr, x, pe_res)


def make_pe_table(max_len, d_model):
    """Sin/cos positional-encoding buffer (matches the PyTorch __init__ after
    .squeeze()); built once as a constant, analogous to register_buffer."""
    position = jnp.arange(max_len, dtype=jnp.float32)[:, None]          # (L, 1)
    div_term = jnp.exp(
        jnp.arange(0, d_model, 2, dtype=jnp.float32)
        * (-math.log(10000.0) / d_model)
    )                                                                    # (D/2,)
    pe = jnp.zeros((max_len, d_model), dtype=jnp.float32)
    pe = pe.at[:, 0::2].set(jnp.sin(position * div_term))
    pe = pe.at[:, 1::2].set(jnp.cos(position * div_term))
    return pe


if __name__ == "__main__":
    # Small shapes consistent with the module: x is (max_len, d_model).
    # d_model = 128 keeps the output lane-dense; tile_rows = 16 exercises a
    # multi-step, pipelined grid (64 / 16 = 4 tiles).
    max_len = 64
    d_model = 128
    dropout_p = 0.1

    key = jax.random.PRNGKey(0)
    x = jax.random.normal(key, (max_len, d_model), dtype=jnp.float32)
    pe = make_pe_table(max_len, d_model)

    # Eval mode: dropout is identity -> must match x + pe.
    out_eval = positional_encoding_forward(x, pe, seed=0, p=dropout_p,
                                           training=False, tile_rows=16)
    out_eval = jax.block_until_ready(out_eval)
    ref = x + pe
    assert jnp.allclose(out_eval, ref, atol=1e-6), "eval-mode mismatch"

    # Train mode: inverted dropout. Survivors are ref/(1-p), dropped are 0.
    out_train = positional_encoding_forward(x, pe, seed=123, p=dropout_p,
                                            training=True, tile_rows=16)
    out_train = jax.block_until_ready(out_train)
    assert out_train.shape == x.shape
    scaled = ref / (1.0 - dropout_p)
    dropped = out_train == 0.0
    ok = jnp.where(dropped, True,
                   jnp.isclose(out_train, scaled, rtol=1e-5, atol=1e-6))
    assert bool(jnp.all(ok)), "train-mode survivors not scaled correctly"
    drop_frac = float(jnp.mean(dropped.astype(jnp.float32)))
    assert 0.01 < drop_frac < 0.35, f"implausible drop fraction {drop_frac}"

    print("KERNEL_OK")
</pallas_src>

<mosaic_0001>
module attributes {stable_mosaic.version = 11 : i64} {
  func.func @_pe_dropout_kernel(%arg0: i32, %arg1: memref<1xi32, #tpu.memory_space<smem>>, %arg2: memref<16x128xf32, #tpu.memory_space<vmem>>, %arg3: memref<64x128xf32, #tpu.memory_space<vmem>>, %arg4: memref<16x128xf32, #tpu.memory_space<vmem>>) attributes {dimension_semantics = [#tpu.dimension_semantics<parallel>], iteration_bounds = array<i64: 4>, scalar_prefetch = 1 : i64, scratch_operands = 0 : i64, tpu.core_type = #tpu.core_type<tc>, window_params = [{transform_indices = @transform_0, window_bounds = array<i64: 16, 128>}, {pipeline_mode = #tpu.pipeline_mode<synchronous>, transform_indices = @transform_1, window_bounds = array<i64: 64, 128>}, {transform_indices = @transform_2, window_bounds = array<i64: 16, 128>}]} {
    %c16_i32 = arith.constant 16 : i32
    %0 = arith.muli %arg0, %c16_i32 : i32
    %1 = tpu.assume_multiple %0, 16 : i32
    %2 = arith.index_cast %1 : i32 to index
    %c0 = arith.constant 0 : index
    %3 = vector.load %arg3[%2, %c0] : memref<64x128xf32, #tpu.memory_space<vmem>>, vector<16x128xf32>
    %c0_0 = arith.constant 0 : index
    %c0_1 = arith.constant 0 : index
    %4 = vector.load %arg2[%c0_0, %c0_1] : memref<16x128xf32, #tpu.memory_space<vmem>>, vector<16x128xf32>
    %5 = arith.addf %4, %3 : vector<16x128xf32>
    %c0_2 = arith.constant 0 : index
    %c0_3 = arith.constant 0 : index
    %6 = vector.load %arg4[%c0_2, %c0_3] : memref<16x128xf32, #tpu.memory_space<vmem>>, vector<16x128xf32>
    tpu.vector_store %arg4[%c0_2, %c0_3], %5 {strides = array<i32>} : memref<16x128xf32, #tpu.memory_space<vmem>>, vector<16x128xf32>,
    return
  }
  func.func @transform_0(%arg0: i32, %arg1: memref<1xi32, #tpu.memory_space<smem>>) -> (i32, i32) {
    %c0_i32 = arith.constant 0 : i32
    %c0_i32_0 = arith.constant 0 : i32
    return %arg0, %c0_i32 : i32, i32
  }
  func.func @transform_1(%arg0: i32, %arg1: memref<1xi32, #tpu.memory_space<smem>>) -> (i32, i32) {
    %c0_i32 = arith.constant 0 : i32
    %c0_i32_0 = arith.constant 0 : i32
    %c0_i32_1 = arith.constant 0 : i32
    return %c0_i32, %c0_i32_0 : i32, i32
  }
  func.func @transform_2(%arg0: i32, %arg1: memref<1xi32, #tpu.memory_space<smem>>) -> (i32, i32) {
    %c0_i32 = arith.constant 0 : i32
    %c0_i32_0 = arith.constant 0 : i32
    return %arg0, %c0_i32 : i32, i32
  }
}

</mosaic_0001>

<bundles_post_ra>
// kernel: tpu_custom_call.1
= control target key start
LH: loop header
LB: loop body
LE: loop exit
PB: predicated region body
PF: predicated region fallthrough
CT: control target
= control target key end

     0   :  { %9 = vsyncpa [#allocation5], 0  ;;  %s703_s0 = inlined_call_operand.<no memory space> [shape: s32[1], index: 0, kind: input, shape index: {}]   ;;  %s704_s1 = inlined_call_operand.hbm [shape: f32[64,128], index: 1, kind: input, shape index: {}]   ;;  %s705_s2 = inlined_call_operand.hbm [shape: f32[64,128], index: 2, kind: input, shape index: {}]   ;;  %s706_s3 = inlined_call_operand.hbm [shape: f32[64,128], index: 3, kind: output, shape index: {}]  }
   0x1   :  { %11 = vsyncpa [#allocation5 + $0x1], 0 }
   0x2   :  { %12 = vsyncpa [#allocation8], 0 }
   0x3   :  { %13 = vsyncpa [#allocation6], 0 }
   0x4   :  { %15 = vsyncpa [#allocation6 + $0x1], 0  ;;  %s521_s12 = smov 0   ;;  %s523_s13 = smov 0  }
   0x5   :  { %s525_s14 = smov 0   ;;  %s527_s0 = smov 0  }
   0x6 LB: > { %s542_s15 = sadd.s32 4294967295, %s492_s0   ;;  %s290_s16 = sadd.s32 4294967294, %s492_s0   ;;  %s492_s0 = sphi %s527_s0, %s727_s0   ;;  %s488_s14 = sphi %s525_s14, %s726_s14   ;;  %s484_s13 = sphi %s523_s13, %s725_s13   ;;  %s480_s12 = sphi %s521_s12, %s724_s12  }
   0x7   : > { %p41_p0 = scmp.ne.s32.totalorder %s484_s13, %s480_s12  ;;  %p707_p1 = scmp.eq.s32.totalorder %s542_s15, 0 }
   0x8   : > { %p92_p3 = scmp.eq.s32.totalorder %s290_s16, 3  ;;  %p291_p5 = scmp.ge.s32.totalorder %s492_s0, 1 }
   0x9   : > { %p551_p4 = por %p707_p1, %p41_p0  ;;  %p99_p7 = scmp.lt.s32.totalorder %s492_s0, 5 }
   0xa   : > { %p556_p6 = por %p92_p3, %p41_p0  ;;  %s494_s20 = smov [#allocation7]  }
   0xb   : > { %s711_s17 = scalar_select %p551_p4, 1, 0 }
   0xc   : > { %s712_s18 = scalar_select %p556_p6, 1, 0 }
   0xd   : > { %p561_p8 = pnand %p291_p5, %p99_p7  ;;  %s111_s21 = sshll.u32 %s494_s20, 4  ;;  %s112_s21 = int_to_ptr.vmem [resolvable:$true] %s111_s21 }
   0xe   : > { %s574_s23 = sadd.s32 1, %s492_s0   ;;  %s28_s24 = sadd.s32 1, %s488_s14 }
   0xf   : > { %s713_s19 = scalar_select %p561_p8, 1, 0 }
  0x10   : > { %p317_p9 = pneg %p561_p8  ;;  %s25_s25 = ssub.s32 %s492_s0, %s574_s23 }
  0x11   : > { %s381_s26 = scalar_lea.vmem %s112_s21, 1024  ;;  %p389_p3 = scmp.lt.s32.totalorder %s112_s21, %s112_s21 }
  0x12   : > { %p569_p10 = pnand %p317_p9, %p707_p1  ;;  %p382_p12 = scmp.ne.s32.totalorder %s112_s21, %s381_s26 }
  0x13   : > { %p390_p5 = scmp.lt.s32.totalorder %s381_s26, %s381_s26 }
  0x14   : > { %p372_p11 = pneg %p569_p10 }
  0x15   : > { %p391_p7 = por %p390_p5, %p389_p3 }
  0x16   : > { %p384_p13 = pnand %p382_p12, %p372_p11 }
  0x18   : > { %p385_p0 = pneg %p384_p13 }
  0x1a   : > { %p392_p2 = pnand %p391_p7, %p385_p0 }
  0x1c   : > { %395 = shalt.err (!%p392_p2)
}
  0x1d   : > { %s495_s27 = smov 128   ;;  %s496_s28 = smov 8  }
  0x1e   : > { %320 = dma.hbm_to_vmem [thread:$0]  (!%p569_p10), %s705_s2, 1024, %s112_s21, [#allocation8], %s495_s27, %s495_s27, %s496_s28  }
  0x1f   : > { %p26_p2 = scmp.eq.s32.totalorder %s25_s25, 0  ;;  %p35_p9 = scmp.ne.s32.totalorder %s488_s14, %s484_s13 }
  0x20   : > { %p36_p11 = scmp.eq.s32.totalorder %s492_s0, 0  ;;  %p330_p12 = scmp.lt.s32.totalorder %s492_s0, 4 }
  0x21   : > { %s594_s4 = scalar_select %p26_p2, %s488_s14, %s28_s24  }
  0x22   : > { %p37_p13 = por %p36_p11, %p35_p9  ;;  %p715_p0 = scmp.eq.s32.totalorder %s542_s15, 3 }
  0x23   : > { %s125_s6 = sand.u32 1, %s488_s14   ;;  %s307_s7 = sshll.u32 %s492_s0, 8 }
  0x24   : > { %p598_p3 = por %p715_p0, %p35_p9  ;;  %s294_s8 = sshll.u32 %s125_s6, 4 }
  0x25   : > { %s607_s11 = scalar_lea.hbm %s704_s1, %s307_s7  ;;  %s129_s16 = scalar_lea.vmem [#allocation4], %s294_s8 }
  0x26   : > { %s716_s5 = scalar_select %p598_p3, 1, 0 }
  0x27   : > { %s136_s20 = sshll.u32 %s129_s16, 4  ;;  %p609_p10 = pnand %p330_p12, %p37_p13  ;;  %s613_s20 = int_to_ptr.vmem [resolvable:$true] %s136_s20 }
  0x28   : > { %s615_s22 = scalar_lea.sflag [#allocation5], %s125_s6  ;;  %s396_s24 = scalar_lea.hbm %s607_s11, 256 }
  0x29   : > { %p397_p5 = scmp.ne.s32.totalorder %s607_s11, %s396_s24  ;;  %p398_p7 = pneg %p609_p10 }
  0x2a   : > { %s401_s29 = scalar_lea.hbm %s704_s1, 1024  ;;  %p402_p11 = scmp.lt.s32.totalorder %s607_s11, %s704_s1 }
  0x2b   : > { %p399_p2 = pnand %p398_p7, %p397_p5  ;;  %p403_p12 = scmp.lt.s32.totalorder %s401_s29, %s396_s24 }
  0x2d   : > { %p400_p9 = pneg %p399_p2  ;;  %p404_p13 = por %p403_p12, %p402_p11 }
  0x2f   : > { %p405_p0 = pnand %p404_p13, %p400_p9 }
  0x31   : > { %408 = shalt.err (!%p405_p0)
}
  0x32   : > { %s409_s6 = scalar_lea.vmem %s613_s20, 256  ;;  %s497_s8 = smov [#allocation4]  }
  0x33   : > { %p410_p1 = scmp.ne.s32.totalorder %s613_s20, %s409_s6  ;;  %s414_s9 = sshll.u32 %s497_s8, 4  ;;  %s415_s9 = int_to_ptr.vmem [resolvable:$false] %s414_s9 }
  0x34   : > { %s416_s10 = scalar_lea.vmem %s415_s9, 512  ;;  %p417_p2 = scmp.lt.s32.totalorder %s613_s20, %s415_s9 }
  0x35   : > { %p412_p6 = pnand %p410_p1, %p398_p7  ;;  %p418_p3 = scmp.lt.s32.totalorder %s416_s10, %s409_s6 }
  0x37   : > { %p413_p5 = pneg %p412_p6  ;;  %p419_p4 = por %p418_p3, %p417_p2 }
  0x39   : > { %p420_p8 = pnand %p419_p4, %p413_p5 }
  0x3b   : > { %423 = shalt.err (!%p420_p8)
}
  0x3c   : > { %324 = dma.hbm_to_vmem [thread:$0]  (!%p609_p10), %s607_s11, 256, %s613_s20, %s615_s22, %s495_s27, %s495_s27, %s496_s28  }
  0x3d   : > { %p718_p1 = scmp.ne.s32.totalorder %s713_s19, 0 }
  0x3e   : > { %s642_s16 = sand.u32 (!%p718_p1), 1, %s484_s13   ;;  %p719_p4 = scmp.ne.s32.totalorder (!%p718_p1), %s711_s17, 0 }
  0x3f   : > { %148 = sbr.rel (%p718_p1) target bundleno = 99 (0x63), region = 28  ;;  %s298_s24 = sshll.u32 (!%p718_p1), %s642_s16, 4 }
  0x40   : > { %s151_s25 = scalar_lea.sflag (!%p718_p1), [#allocation5], %s642_s16  ;;  %s154_s26 = scalar_lea.vmem (!%p718_p1), [#allocation4], %s298_s24 }
  0x44   : > { %467 = dma.done.wait (%p719_p4), %s151_s25, 256  }
  0x45   : > { %469 = vsyncadd (%p719_p4), %s151_s25, 4294967040  ;;  %p720_p6 = scmp.eq.s32.totalorder %s542_s15, 0 }
  0x47   : > { %471 = dma.done.wait (%p720_p6), [#allocation8], 1024   ;;  %p721_p8 = pmov %p720_p6 }
  0x48   : > { %s301_s19 = sshll.u32 %s542_s15, 4  ;;  %s178_s27 = scalar_lea.vmem [#allocation9], %s298_s24  ;;  %v185_v1 = vld [vmem:[%s154_s26] sm:$0xff]  ;;  %v186_v4 = vld [vmem:[%s154_s26 + $0x8] sm:$0xff] }
  0x49   : > { %473 = vsyncadd (%p721_p8), [#allocation8], 4294966272  ;;  %s205_s28 = sshll.u32 %s178_s27, 4  ;;  %s308_s11 = sshll.u32 %s542_s15, 8  ;;  %s656_s28 = int_to_ptr.vmem [resolvable:$true] %s205_s28 }
  0x4a   : > { %s182_s20 = scalar_lea.vmem [#allocation7], %s301_s19  ;;  %s661_s22 = scalar_lea.hbm %s706_s3, %s308_s11 }
  0x4b   : > { %v183_v0 = vld [vmem:[%s182_s20] sm:$0xff]  ;;  %v184_v2 = vld [vmem:[%s182_s20 + $0x8] sm:$0xff]  ;;  %s192_s15 = scalar_lea.sflag [#allocation6], %s642_s16  ;;  %s424_s29 = scalar_lea.vmem %s656_s28, 256 }
  0x4c   : > { %v187_v3 = vadd.f32 %v185_v1, %v183_v0  ;;  %v188_v5 = vadd.f32 %v186_v4, %v184_v2  ;;  %p425_p3 = scmp.ne.s32.totalorder %s656_s28, %s424_s29  ;;  %p722_p10 = scmp.ne.s32.totalorder %s716_s5, 0 }
  0x4d   : > { %s498_s30 = smov [#allocation9]  }
  0x4e   : > { %189 = vst [vmem:[%s178_s27] sm:$0xff] %v187_v3  ;;  %190 = vst [vmem:[%s178_s27 + $0x8] sm:$0xff] %v188_v5  ;;  %p426_p7 = pnand %p425_p3, %p722_p10  ;;  %s428_s7 = sshll.u32 %s498_s30, 4  ;;  %s429_s7 = int_to_ptr.vmem [resolvable:$false] %s428_s7 }
  0x4f   : > { %s430_s6 = scalar_lea.vmem %s429_s7, 512  ;;  %p431_p11 = scmp.lt.s32.totalorder %s656_s28, %s429_s7 }
  0x50   : > { %p427_p9 = pneg %p426_p7  ;;  %p432_p12 = scmp.lt.s32.totalorder %s430_s6, %s424_s29 }
  0x52   : > { %p433_p13 = por %p432_p12, %p431_p11 }
  0x54   : > { %p434_p0 = pnand %p433_p13, %p427_p9 }
  0x56   : > { %437 = shalt.err (!%p434_p0)
}
  0x57   : > { %s438_s8 = scalar_lea.hbm %s661_s22, 256  ;;  %s442_s24 = scalar_lea.hbm %s706_s3, 1024 }
  0x58   : > { %p439_p5 = scmp.ne.s32.totalorder %s661_s22, %s438_s8  ;;  %p443_p4 = scmp.lt.s32.totalorder %s661_s22, %s706_s3 }
  0x59   : > { %p444_p6 = scmp.lt.s32.totalorder %s442_s24, %s438_s8 }
  0x5a   : > { %p440_p2 = pnand %p439_p5, %p722_p10 }
  0x5b   : > { %p445_p8 = por %p444_p6, %p443_p4 }
  0x5c   : > { %p441_p1 = pneg %p440_p2 }
  0x5e   : > { %p446_p3 = pnand %p445_p8, %p441_p1 }
  0x60   : > { %449 = shalt.err (!%p446_p3)
}
  0x61   : > { %s499_s19 = smov 128   ;;  %s500_s27 = smov 8  }
  0x62   : > { %315 = dma.vmem_to_hbm [thread:$0]  (%p722_p10), %s656_s28, 256, %s661_s22, %s192_s15, %s499_s19, %s499_s19, %s500_s27  }
  0x63 PF: > { %p332_p7 = scmp.ge.s32.totalorder %s492_s0, 2  ;;  %s220_s11 = sand.u32 1, %s480_s12  }
  0x64   : > { %p723_p9 = scmp.ne.s32.totalorder %s712_s18, 0  ;;  %s221_s20 = scalar_lea.sflag [#allocation6], %s220_s11 }
  0x66   : > { %p326_p11 = pnand %p332_p7, %p723_p9 }
  0x68   : > { %p327_p12 = pneg %p326_p11 }
  0x6a   : > { %475 = dma.done.wait (%p327_p12), %s221_s20, 256  }
  0x6b   : > { %477 = vsyncadd (%p327_p12), %s221_s20, 4294967040  ;;  %p18_p13 = scmp.ge.s32.totalorder %s574_s23, 6   ;;  %s724_s12 = smov %s484_s13 }
  0x6c   : > { %s725_s13 = smov %s488_s14  ;;  %s726_s14 = smov %s594_s4 }
  0x6d   : > { %s727_s0 = smov %s574_s23  ;;  %20 = sbr.rel (!%p18_p13) target bundleno = 6 (0x6), region = 78 }
  0x72   :  { %226 = vsyncpa [#allocation5], 1 }
  0x73   :  { %228 = vsyncpa [#allocation5 + $0x1], 1 }
  0x74   :  { %229 = vsyncpa [#allocation8], 1 }
  0x75   :  { %230 = vsyncpa [#allocation6], 1 }
  0x76   :  { %232 = vsyncpa [#allocation6 + $0x1], 1 }

</bundles_post_ra>
